<compile_context>
chip_gen: v6e
topology: v6e:2x2x1
jax: 0.10.0
libtpu: 0.0.40
codegen_flags: <defaults>
</compile_context>

<pallas_src>
import functools

import jax
import jax.numpy as jnp
from jax.experimental import pallas as pl
from jax.experimental.pallas import tpu as pltpu


def _round_up(x, m):
    return ((x + m - 1) // m) * m


# 48 MiB scoped VMEM: plenty for these tiles + the resident X/W blocks, and
# leaves headroom under v7x's 64 MiB physical VMEM (v5e/v6e have 128 MiB).
_VMEM_LIMIT = 48 * 1024 * 1024


# ---------------------------------------------------------------------------
# index maps (scalar-prefetch refs klo/khi arrive as trailing positional args)
# ---------------------------------------------------------------------------
def _a_index_map(i, k, klo, khi):
    # Clamp the contraction block index into this row tile's active range.
    # Out-of-range k steps revisit the same block index, so Pallas skips the
    # A_hat DMA for them; the kernel additionally pl.when-skips the compute.
    kk = jnp.maximum(jnp.minimum(k, khi[i] - 1), klo[i])
    return (i, kk)


# ---------------------------------------------------------------------------
# Fused GCN layer kernel:  H = [ReLU]( A_hat @ (X @ W) + b )
#   grid = (row tiles "parallel", contraction tiles "arbitrary")
#   A_hat streamed tile-by-tile; X and W VMEM-resident; f32 acc scratch.
# ---------------------------------------------------------------------------
def _gcn_layer_kernel(klo_ref, khi_ref, a_ref, x_ref, w_ref, b_ref,
                      h_ref, acc_ref, *, relu, tile_k):
    i = pl.program_id(0)
    k = pl.program_id(1)

    @pl.when(k == 0)
    def _():
        acc_ref[...] = jnp.zeros_like(acc_ref)

    in_range = jnp.logical_and(k >= klo_ref[i], k < khi_ref[i])

    @pl.when(in_range)
    def _():
        # xw_k = X[k_tile] @ W recomputed per step (kernel is HBM-bound; the
        # extra MXU work is hidden) -> no XW HBM round trip, no XW re-stream.
        col0 = pl.multiple_of(k * tile_k, tile_k)
        xw_k = jnp.dot(
            x_ref[pl.ds(col0, tile_k), :], w_ref[...],
            preferred_element_type=jnp.float32,
        ).astype(jnp.bfloat16)
        acc_ref[...] += jnp.dot(a_ref[...], xw_k,
                                preferred_element_type=jnp.float32)

    @pl.when(k == pl.num_programs(1) - 1)
    def _():
        # NOTE: padded rows (>= N) get bias(+ReLU) garbage; benign because the
        # corresponding A_hat / P columns are exactly zero and outputs sliced.
        h = acc_ref[...] + b_ref[...]
        if relu:
            h = jnp.maximum(h, 0.0)
        h_ref[...] = h.astype(h_ref.dtype)


def _gcn_layer_pool_kernel(klo_ref, khi_ref, a_ref, x_ref, w_ref, b_ref, p_ref,
                           h_ref, pooled_ref, acc_ref, *, relu, tile_k):
    i = pl.program_id(0)
    k = pl.program_id(1)

    @pl.when(k == 0)
    def _():
        acc_ref[...] = jnp.zeros_like(acc_ref)

    in_range = jnp.logical_and(k >= klo_ref[i], k < khi_ref[i])

    @pl.when(in_range)
    def _():
        col0 = pl.multiple_of(k * tile_k, tile_k)
        xw_k = jnp.dot(
            x_ref[pl.ds(col0, tile_k), :], w_ref[...],
            preferred_element_type=jnp.float32,
        ).astype(jnp.bfloat16)
        acc_ref[...] += jnp.dot(a_ref[...], xw_k,
                                preferred_element_type=jnp.float32)

    @pl.when(k == pl.num_programs(1) - 1)
    def _():
        h = acc_ref[...] + b_ref[...]
        if relu:
            h = jnp.maximum(h, 0.0)
        h_ref[...] = h.astype(h_ref.dtype)
        # per-row-tile pooled PARTIAL (reduced outside in XLA): keeps the row
        # axis "parallel" -> no cross-tile accumulator race on v7x megacore.
        pooled_ref[...] = jnp.dot(
            p_ref[...], h.astype(p_ref.dtype),
            preferred_element_type=jnp.float32)


def gcn_layer(a_bf16, x_bf16, w_bf16, b_f32, klo, khi, *,
              relu, out_dtype, tile):
    n_pad = a_bf16.shape[0]
    f_in = x_bf16.shape[1]
    f_out = w_bf16.shape[1]
    row_tiles = n_pad // tile
    return pl.pallas_call(
        functools.partial(_gcn_layer_kernel, relu=relu, tile_k=tile),
        out_shape=jax.ShapeDtypeStruct((n_pad, f_out), out_dtype),
        grid_spec=pltpu.PrefetchScalarGridSpec(
            num_scalar_prefetch=2,
            grid=(row_tiles, row_tiles),
            in_specs=[
                pl.BlockSpec((tile, tile), _a_index_map),                    # A_hat
                pl.BlockSpec((n_pad, f_in), lambda i, k, lo, hi: (0, 0)),    # X resident
                pl.BlockSpec((f_in, f_out), lambda i, k, lo, hi: (0, 0)),    # W resident
                pl.BlockSpec((1, f_out), lambda i, k, lo, hi: (0, 0)),       # bias
            ],
            out_specs=pl.BlockSpec((tile, f_out), lambda i, k, lo, hi: (i, 0)),
            scratch_shapes=[pltpu.VMEM((tile, f_out), jnp.float32)],
        ),
        compiler_params=pltpu.CompilerParams(
            dimension_semantics=("parallel", "arbitrary"),
            vmem_limit_bytes=_VMEM_LIMIT,
        ),
    )(klo, khi, a_bf16, x_bf16, w_bf16, b_f32)


def gcn_layer_pool(a_bf16, x_bf16, w_bf16, b_f32, p_bf16, klo, khi, *,
                   relu, out_dtype, tile):
    n_pad = a_bf16.shape[0]
    f_in = x_bf16.shape[1]
    f_out = w_bf16.shape[1]
    g_pad = p_bf16.shape[0]
    row_tiles = n_pad // tile
    return pl.pallas_call(
        functools.partial(_gcn_layer_pool_kernel, relu=relu, tile_k=tile),
        out_shape=(
            jax.ShapeDtypeStruct((n_pad, f_out), out_dtype),
            jax.ShapeDtypeStruct((row_tiles, g_pad, f_out), jnp.float32),
        ),
        grid_spec=pltpu.PrefetchScalarGridSpec(
            num_scalar_prefetch=2,
            grid=(row_tiles, row_tiles),
            in_specs=[
                pl.BlockSpec((tile, tile), _a_index_map),                    # A_hat
                pl.BlockSpec((n_pad, f_in), lambda i, k, lo, hi: (0, 0)),    # X resident
                pl.BlockSpec((f_in, f_out), lambda i, k, lo, hi: (0, 0)),    # W resident
                pl.BlockSpec((1, f_out), lambda i, k, lo, hi: (0, 0)),       # bias
                pl.BlockSpec((g_pad, tile), lambda i, k, lo, hi: (0, i)),    # P slice
            ],
            out_specs=(
                pl.BlockSpec((tile, f_out), lambda i, k, lo, hi: (i, 0)),
                pl.BlockSpec((None, g_pad, f_out), lambda i, k, lo, hi: (i, 0, 0)),
            ),
            scratch_shapes=[pltpu.VMEM((tile, f_out), jnp.float32)],
        ),
        compiler_params=pltpu.CompilerParams(
            dimension_semantics=("parallel", "arbitrary"),
            vmem_limit_bytes=_VMEM_LIMIT,
        ),
    )(klo, khi, a_bf16, x_bf16, w_bf16, b_f32, p_bf16)


# ---------------------------------------------------------------------------
# GCN module (parameter setup + graph preprocessing = glue, compute = Pallas)
# ---------------------------------------------------------------------------
class PallasGCN:
    """Concrete GCN matching AbstractGCN(shape, pooling) semantics."""

    def __init__(self, shape, pooling=True, key=None, tile_cap=512):
        self.shape = tuple(shape)
        self.pooling = pooling
        self.tile_cap = tile_cap  # 512 reaches ~85% HBM roofline; auto-capped by N
        key = jax.random.PRNGKey(0) if key is None else key
        self.weights = []
        self.biases = []
        for i in range(len(self.shape) - 1):
            key, wk = jax.random.split(key)
            f_in, f_out = self.shape[i], self.shape[i + 1]
            scale = 1.0 / jnp.sqrt(jnp.float32(f_in))
            w = jax.random.uniform(
                wk, (f_in, f_out), jnp.float32, minval=-scale, maxval=scale
            )
            b = jnp.zeros((1, f_out), jnp.float32)
            self.weights.append(w)
            self.biases.append(b)

    # ----- glue: graph preprocessing (scatter -> dense), not the hot path -----
    @staticmethod
    def _normalized_adjacency(edge_index, num_nodes):
        # A_hat = D^{-1/2} (A + I) D^{-1/2}; diagonal set to exactly 1
        # (dedup-safe even if edge_index already contains self-loops).
        src, dst = edge_index
        adj = jnp.zeros((num_nodes, num_nodes), jnp.float32)
        adj = adj.at[src, dst].set(1.0)
        adj = adj.at[dst, src].set(1.0)  # undirected
        idx = jnp.arange(num_nodes)
        adj = adj.at[idx, idx].set(1.0)  # self-loops
        deg = jnp.sum(adj, axis=1)
        d_inv_sqrt = 1.0 / jnp.sqrt(jnp.maximum(deg, 1e-12))
        return adj * d_inv_sqrt[:, None] * d_inv_sqrt[None, :]

    @staticmethod
    def _pool_matrix(batch_vec, num_graphs, num_nodes):
        onehot = (
            jnp.arange(num_graphs)[:, None] == batch_vec[None, :]
        ).astype(jnp.float32)
        counts = jnp.maximum(jnp.sum(onehot, axis=1, keepdims=True), 1.0)
        return onehot / counts

    @staticmethod
    def _tile_k_ranges(batch_vec, num_nodes, n_pad, tile, num_graphs):
        """Per-row-tile active [klo, khi) contraction-block ranges (block-diag skip).

        With PyG's contiguous per-graph node ordering, A_hat[row, col] != 0 only
        when row and col are in the same graph, so each row tile only needs the
        column blocks covering the graphs it touches.  Falls back to the full
        range if batch_vec is not sorted (conservative => always correct).
        """
        row_tiles = n_pad // tile
        batch_vec = batch_vec.astype(jnp.int32)
        gids = jnp.arange(num_graphs, dtype=jnp.int32)
        counts = jnp.sum((gids[:, None] == batch_vec[None, :]).astype(jnp.int32), axis=1)
        ends = jnp.cumsum(counts)          # exclusive end per graph
        starts = ends - counts
        ti = jnp.arange(row_tiles, dtype=jnp.int32)
        first_node = jnp.minimum(ti * tile, num_nodes - 1)
        last_node = jnp.minimum((ti + 1) * tile, num_nodes) - 1
        klo = starts[batch_vec[first_node]] // tile
        khi = (ends[batch_vec[last_node]] + tile - 1) // tile
        # tiles that are pure padding: A_hat rows are all zero -> single block
        pad_tile = (ti * tile) >= num_nodes
        klo = jnp.where(pad_tile, 0, klo)
        khi = jnp.where(pad_tile, 1, khi)
        # only valid for contiguous (sorted) batch vectors; otherwise full range
        is_sorted = jnp.all(batch_vec[1:] >= batch_vec[:-1])
        klo = jnp.where(is_sorted, klo, 0).astype(jnp.int32)
        khi = jnp.where(is_sorted, khi, row_tiles).astype(jnp.int32)
        return klo, khi

    # ----- forward -----
    def forward(self, x, edge_index, batch_vec, num_graphs):
        """Returns (features [N, shape[-1]], pooled [G, shape[-1]] or None)."""
        n, f_in = x.shape
        tile = min(self.tile_cap, _round_up(max(n, 128), 128))
        n_pad = _round_up(n, tile)

        # normalized adjacency, padded + cast to bf16 once, reused every layer
        a_hat = self._normalized_adjacency(edge_index, n)
        a_pad = (
            jnp.zeros((n_pad, n_pad), jnp.float32).at[:n, :n].set(a_hat)
        ).astype(jnp.bfloat16)

        # padded node features, bf16 (lane-dense, VMEM-resident inside kernel)
        f0_pad = _round_up(self.shape[0], 128)
        h = (
            jnp.zeros((n_pad, f0_pad), jnp.float32)
            .at[:n, :f_in]
            .set(x.astype(jnp.float32))
        ).astype(jnp.bfloat16)

        # per-row-tile contraction ranges (block-diagonal A_hat skip)
        klo, khi = self._tile_k_ranges(batch_vec, n, n_pad, tile, num_graphs)

        p_pad = None
        if self.pooling:
            g_pad = _round_up(max(num_graphs, 16), 16)  # 16: bf16 sublane packing
            p = self._pool_matrix(batch_vec, num_graphs, n)
            p_pad = (
                jnp.zeros((g_pad, n_pad), jnp.float32)
                .at[:num_graphs, :n]
                .set(p)
            ).astype(jnp.bfloat16)

        pooled = None
        n_layers = len(self.weights)
        for li, (w, b) in enumerate(zip(self.weights, self.biases)):
            fi_pad = _round_up(w.shape[0], 128)
            fo_pad = _round_up(w.shape[1], 128)
            w_pad = (
                jnp.zeros((fi_pad, fo_pad), jnp.float32)
                .at[: w.shape[0], : w.shape[1]]
                .set(w)
            ).astype(jnp.bfloat16)
            b_pad = jnp.zeros((1, fo_pad), jnp.float32).at[:, : w.shape[1]].set(b)

            last = li == n_layers - 1
            relu = not last
            # bf16 intermediates halve H traffic; final features stay f32.
            out_dtype = jnp.float32 if last else jnp.bfloat16

            if self.pooling and last:
                h, pooled_parts = gcn_layer_pool(
                    a_pad, h, w_pad, b_pad, p_pad, klo, khi,
                    relu=relu, out_dtype=out_dtype, tile=tile)
                pooled = jnp.sum(pooled_parts, axis=0)  # tiny XLA reduce of partials
            else:
                h = gcn_layer(
                    a_pad, h, w_pad, b_pad, klo, khi,
                    relu=relu, out_dtype=out_dtype, tile=tile)

        features = h[:n, : self.shape[-1]]
        if pooled is not None:
            pooled = pooled[:num_graphs, : self.shape[-1]]
        return features, pooled


# ---------------------------------------------------------------------------
# Demo / smoke test
# ---------------------------------------------------------------------------
if __name__ == "__main__":
    key = jax.random.PRNGKey(0)

    # Synthetic PyG-style batch: 2 graphs, 200 nodes total, 8-dim features.
    num_nodes = 200
    num_graphs = 2
    feat_in = 8
    shape = (feat_in, 32, 16)  # GCN layer widths

    key, kx = jax.random.split(key)
    x = jax.random.normal(kx, (num_nodes, feat_in), jnp.float32)

    # nodes 0..119 -> graph 0, nodes 120..199 -> graph 1 (contiguous, PyG-style)
    n_g0 = 120
    n_g1 = num_nodes - n_g0
    batch_vec = jnp.concatenate(
        [jnp.zeros((n_g0,), jnp.int32), jnp.ones((n_g1,), jnp.int32)]
    )

    # deterministic intra-graph ring edges (COO)
    r0 = jnp.arange(n_g0, dtype=jnp.int32)
    r1 = jnp.arange(n_g1, dtype=jnp.int32)
    src = jnp.concatenate([r0, n_g0 + r1])
    dst = jnp.concatenate([(r0 + 1) % n_g0, n_g0 + (r1 + 1) % n_g1])
    edge_index = (src, dst)

    model = PallasGCN(shape, pooling=True, key=key)
    features, pooled = model.forward(x, edge_index, batch_vec, num_graphs)
    features = jax.block_until_ready(features)
    pooled = jax.block_until_ready(pooled)

    # Reference in plain f32 JAX (kernel uses bf16 MXU operands + bf16
    # intermediate H -> loose tolerance).
    a_hat = PallasGCN._normalized_adjacency(edge_index, num_nodes)
    h_ref = x.astype(jnp.float32)
    for li, (w, b) in enumerate(zip(model.weights, model.biases)):
        h_ref = a_hat @ (h_ref @ w) + b
        if li < len(model.weights) - 1:
            h_ref = jnp.maximum(h_ref, 0.0)
    p_mat = PallasGCN._pool_matrix(batch_vec, num_graphs, num_nodes)
    pooled_ref = p_mat @ h_ref

    assert features.shape == (num_nodes, shape[-1])
    assert pooled.shape == (num_graphs, shape[-1])
    assert jnp.allclose(features, h_ref, atol=5e-2, rtol=5e-2)
    assert jnp.allclose(pooled, pooled_ref, atol=5e-2, rtol=5e-2)

    print("KERNEL_OK")
</pallas_src>

<mosaic_0001>
module attributes {stable_mosaic.version = 11 : i64} {
  func.func @_gcn_layer_kernel(%arg0: i32, %arg1: i32, %arg2: memref<1xi32, #tpu.memory_space<smem>>, %arg3: memref<1xi32, #tpu.memory_space<smem>>, %arg4: memref<256x256xbf16, #tpu.memory_space<vmem>>, %arg5: memref<256x128xbf16, #tpu.memory_space<vmem>>, %arg6: memref<128x128xbf16, #tpu.memory_space<vmem>>, %arg7: memref<1x128xf32, #tpu.memory_space<vmem>>, %arg8: memref<256x128xbf16, #tpu.memory_space<vmem>>, %arg9: memref<256x128xf32, #tpu.memory_space<vmem>>) attributes {dimension_semantics = [#tpu.dimension_semantics<parallel>, #tpu.dimension_semantics<arbitrary>], iteration_bounds = array<i64: 1, 1>, scalar_prefetch = 2 : i64, scratch_operands = 1 : i64, tpu.core_type = #tpu.core_type<tc>, window_params = [{transform_indices = @transform_0, window_bounds = array<i64: 256, 256>}, {pipeline_mode = #tpu.pipeline_mode<synchronous>, transform_indices = @transform_1, window_bounds = array<i64: 256, 128>}, {pipeline_mode = #tpu.pipeline_mode<synchronous>, transform_indices = @transform_2, window_bounds = array<i64: 128, 128>}, {pipeline_mode = #tpu.pipeline_mode<synchronous>, transform_indices = @transform_3, window_bounds = array<i64: 1, 128>}, {transform_indices = @transform_4, window_bounds = array<i64: 256, 128>}]} {
    %c0_i32 = arith.constant 0 : i32
    %0 = arith.cmpi eq, %arg1, %c0_i32 : i32
    %1 = arith.extui %0 : i1 to i32
    %c0_i32_0 = arith.constant 0 : i32
    %2 = arith.cmpi ne, %1, %c0_i32_0 : i32
    scf.if %2 {
      %cst = arith.constant 0.000000e+00 : f32
      %15 = vector.broadcast %cst : f32 to vector<256x128xf32>
      %c0 = arith.constant 0 : index
      %c0_4 = arith.constant 0 : index
      %16 = vector.load %arg9[%c0, %c0_4] : memref<256x128xf32, #tpu.memory_space<vmem>>, vector<256x128xf32>
      tpu.vector_store %arg9[%c0, %c0_4], %15 {strides = array<i32>} : memref<256x128xf32, #tpu.memory_space<vmem>>, vector<256x128xf32>,
    } else {
    }
    %3 = arith.index_cast %arg0 : i32 to index
    %4 = memref.load %arg2[%3] : memref<1xi32, #tpu.memory_space<smem>>
    %5 = arith.cmpi sge, %arg1, %4 : i32
    %6 = arith.index_cast %arg0 : i32 to index
    %7 = memref.load %arg3[%6] : memref<1xi32, #tpu.memory_space<smem>>
    %8 = arith.cmpi slt, %arg1, %7 : i32
    %9 = arith.andi %5, %8 : i1
    %10 = arith.extui %9 : i1 to i32
    %c0_i32_1 = arith.constant 0 : i32
    %11 = arith.cmpi ne, %10, %c0_i32_1 : i32
    scf.if %11 {
      %c256_i32 = arith.constant 256 : i32
      %15 = arith.muli %arg1, %c256_i32 : i32
      %16 = tpu.assume_multiple %15, 256 : i32
      %17 = arith.index_cast %16 : i32 to index
      %c0 = arith.constant 0 : index
      %18 = vector.load %arg5[%17, %c0] : memref<256x128xbf16, #tpu.memory_space<vmem>>, vector<256x128xbf16>
      %c0_4 = arith.constant 0 : index
      %c0_5 = arith.constant 0 : index
      %19 = vector.load %arg6[%c0_4, %c0_5] : memref<128x128xbf16, #tpu.memory_space<vmem>>, vector<128x128xbf16>
      %cst = arith.constant dense<0.000000e+00> : vector<256x128xf32>
      %20 = tpu.matmul %18, %19, %cst {dimension_numbers = #tpu.dot_dimension_numbers<[1], [0], [0], [1], [0, 0, 1, 1], [], []>} : vector<256x128xbf16>, vector<128x128xbf16>, vector<256x128xf32> -> vector<256x128xf32>
      %21 = arith.truncf %20 : vector<256x128xf32> to vector<256x128xbf16>
      %c0_6 = arith.constant 0 : index
      %c0_7 = arith.constant 0 : index
      %22 = vector.load %arg9[%c0_6, %c0_7] : memref<256x128xf32, #tpu.memory_space<vmem>>, vector<256x128xf32>
      %c0_8 = arith.constant 0 : index
      %c0_9 = arith.constant 0 : index
      %23 = vector.load %arg4[%c0_8, %c0_9] : memref<256x256xbf16, #tpu.memory_space<vmem>>, vector<256x256xbf16>
      %cst_10 = arith.constant dense<0.000000e+00> : vector<256x128xf32>
      %24 = tpu.matmul %23, %21, %cst_10 {dimension_numbers = #tpu.dot_dimension_numbers<[1], [0], [0], [1], [0, 0, 1, 1], [], []>} : vector<256x256xbf16>, vector<256x128xbf16>, vector<256x128xf32> -> vector<256x128xf32>
      %25 = arith.addf %22, %24 : vector<256x128xf32>
      %c0_11 = arith.constant 0 : index
      %c0_12 = arith.constant 0 : index
      %26 = vector.load %arg9[%c0_11, %c0_12] : memref<256x128xf32, #tpu.memory_space<vmem>>, vector<256x128xf32>
      tpu.vector_store %arg9[%c0_11, %c0_12], %25 {strides = array<i32>} : memref<256x128xf32, #tpu.memory_space<vmem>>, vector<256x128xf32>,
    } else {
    }
    %c0_i32_2 = arith.constant 0 : i32
    %12 = arith.cmpi eq, %arg1, %c0_i32_2 : i32
    %13 = arith.extui %12 : i1 to i32
    %c0_i32_3 = arith.constant 0 : i32
    %14 = arith.cmpi ne, %13, %c0_i32_3 : i32
    scf.if %14 {
      %c0 = arith.constant 0 : index
      %c0_4 = arith.constant 0 : index
      %15 = vector.load %arg9[%c0, %c0_4] : memref<256x128xf32, #tpu.memory_space<vmem>>, vector<256x128xf32>
      %c0_5 = arith.constant 0 : index
      %c0_6 = arith.constant 0 : index
      %16 = vector.load %arg7[%c0_5, %c0_6] : memref<1x128xf32, #tpu.memory_space<vmem>>, vector<1x128xf32>
      %17 = vector.broadcast %16 : vector<1x128xf32> to vector<256x128xf32>
      %18 = arith.addf %15, %17 : vector<256x128xf32>
      %cst = arith.constant 0.000000e+00 : f32
      %19 = vector.broadcast %cst : f32 to vector<256x128xf32>
      %20 = arith.maximumf %18, %19 : vector<256x128xf32>
      %21 = arith.truncf %20 : vector<256x128xf32> to vector<256x128xbf16>
      %c0_7 = arith.constant 0 : index
      %c0_8 = arith.constant 0 : index
      %22 = vector.load %arg8[%c0_7, %c0_8] : memref<256x128xbf16, #tpu.memory_space<vmem>>, vector<256x128xbf16>
      tpu.vector_store %arg8[%c0_7, %c0_8], %21 {strides = array<i32>} : memref<256x128xbf16, #tpu.memory_space<vmem>>, vector<256x128xbf16>,
    } else {
    }
    return
  }
  func.func @transform_0(%arg0: i32, %arg1: i32, %arg2: memref<1xi32, #tpu.memory_space<smem>>, %arg3: memref<1xi32, #tpu.memory_space<smem>>) -> (i32, i32) {
    %0 = arith.index_cast %arg0 : i32 to index
    %1 = memref.load %arg3[%0] : memref<1xi32, #tpu.memory_space<smem>>
    %c1_i32 = arith.constant 1 : i32
    %2 = arith.subi %1, %c1_i32 : i32
    %3 = arith.minsi %arg1, %2 : i32
    %4 = arith.index_cast %arg0 : i32 to index
    %5 = memref.load %arg2[%4] : memref<1xi32, #tpu.memory_space<smem>>
    %6 = arith.maxsi %3, %5 : i32
    %c0_i32 = arith.constant 0 : i32
    return %arg0, %6 : i32, i32
  }
  func.func @transform_1(%arg0: i32, %arg1: i32, %arg2: memref<1xi32, #tpu.memory_space<smem>>, %arg3: memref<1xi32, #tpu.memory_space<smem>>) -> (i32, i32) {
    %c0_i32 = arith.constant 0 : i32
    %c0_i32_0 = arith.constant 0 : i32
    %c0_i32_1 = arith.constant 0 : i32
    return %c0_i32, %c0_i32_0 : i32, i32
  }
  func.func @transform_2(%arg0: i32, %arg1: i32, %arg2: memref<1xi32, #tpu.memory_space<smem>>, %arg3: memref<1xi32, #tpu.memory_space<smem>>) -> (i32, i32) {
    %c0_i32 = arith.constant 0 : i32
    %c0_i32_0 = arith.constant 0 : i32
    %c0_i32_1 = arith.constant 0 : i32
    return %c0_i32, %c0_i32_0 : i32, i32
  }
  func.func @transform_3(%arg0: i32, %arg1: i32, %arg2: memref<1xi32, #tpu.memory_space<smem>>, %arg3: memref<1xi32, #tpu.memory_space<smem>>) -> (i32, i32) {
    %c0_i32 = arith.constant 0 : i32
    %c0_i32_0 = arith.constant 0 : i32
    %c0_i32_1 = arith.constant 0 : i32
    return %c0_i32, %c0_i32_0 : i32, i32
  }
  func.func @transform_4(%arg0: i32, %arg1: i32, %arg2: memref<1xi32, #tpu.memory_space<smem>>, %arg3: memref<1xi32, #tpu.memory_space<smem>>) -> (i32, i32) {
    %c0_i32 = arith.constant 0 : i32
    %c0_i32_0 = arith.constant 0 : i32
    return %arg0, %c0_i32 : i32, i32
  }
}

</mosaic_0001>

<bundles_post_ra>
// kernel: tpu_custom_call.1
= control target key start
LH: loop header
LB: loop body
LE: loop exit
PB: predicated region body
PF: predicated region fallthrough
CT: control target
= control target key end

     0   :  { %13 = vsyncpa [#allocation7], 0  ;;  %s1975_s0 = inlined_call_operand.<no memory space> [shape: s32[1], index: 0, kind: input, shape index: {}]   ;;  %s1976_s1 = inlined_call_operand.<no memory space> [shape: s32[1], index: 1, kind: input, shape index: {}]   ;;  %s1977_s2 = inlined_call_operand.hbm [shape: bf16[256,256], index: 2, kind: input, shape index: {}]   ;;  %s1978_s3 = inlined_call_operand.hbm [shape: bf16[256,128], index: 3, kind: input, shape index: {}]   ;;  %s1979_s4 = inlined_call_operand.hbm [shape: bf16[128,128], index: 4, kind: input, shape index: {}]   ;;  %s1980_s5 = inlined_call_operand.vmem [shape: f32[1,128], index: 5, kind: input, shape index: {}]   ;;  %s1981_s6 = inlined_call_operand.hbm [shape: bf16[256,128], index: 6, kind: output, shape index: {}]  }
   0x1   :  { %14 = vsyncpa [#allocation10], 0 }
   0x2   :  { %15 = vsyncpa [#allocation8], 0  ;;  %s1829_s21 = smov [#allocation9]   ;;  %s1237_s25 = sadd.s32 4294967295, %s1976_s1 }
   0x3   :  { %s43_s22 = sshll.u32 %s1829_s21, 4  ;;  %s44_s22 = int_to_ptr.vmem [resolvable:$true] %s43_s22 }
   0x4   :  { %s1749_s26 = scalar_lea.vmem %s44_s22, 2048  ;;  %p1754_p1 = scmp.lt.s32.totalorder %s44_s22, %s44_s22 }
   0x5   :  { %p1750_p0 = scmp.ne.s32.totalorder %s44_s22, %s1749_s26  ;;  %p1755_p2 = scmp.lt.s32.totalorder %s1749_s26, %s1749_s26 }
   0x7   :  { %p1756_p3 = por %p1755_p2, %p1754_p1 }
   0x9   :  { %p1757_p4 = pnand %p1756_p3, %p1750_p0 }
   0xb   :  { %1760 = shalt.err (!%p1757_p4)
}
   0xc   :  { %s1830_s27 = smov 64   ;;  %s1831_s28 = smov 4  }
   0xd   :  { %49 = dma.hbm_to_vmem [thread:$0]  %s1978_s3, 2048, %s44_s22, [#allocation10], %s1830_s27, %s1830_s27, %s1831_s28  }
   0xe   :  { %p1238_p5 = scmp.gt.s32.totalorder %s1237_s25, 0  ;;  %s1832_s7 = smov [#allocation6]  }
   0xf   :  { %s31_s8 = sshll.u32 %s1832_s7, 4  ;;  %s1833_s11 = smov [#allocation11]   ;;  %s32_s8 = int_to_ptr.vmem [resolvable:$true] %s31_s8 }
  0x10   :  { %s1983_s25 = smov (%p1238_p5, %s1237_s25), 0  ;;  %s55_s12 = sshll.u32 %s1833_s11, 4  ;;  %s1888_s12 = int_to_ptr.vmem [resolvable:$true] %s55_s12 }
  0x11   :  { %p23_p6 = scmp.gt.s32.totalorder %s1983_s25, %s1975_s0  ;;  %s1763_s21 = scalar_lea.hbm %s1977_s2, 4096 }
  0x13   :  { %s1985_s25 = smov (!%p23_p6, %s1983_s25), %s1975_s0 }
  0x14   :  { %s1332_s15 = sshll.u32 %s1985_s25, 7 }
  0x15   :  { %s30_s17 = scalar_lea.hbm %s1977_s2, %s1332_s15 }
  0x16   :  { %s1761_s18 = scalar_lea.hbm %s30_s17, 4096  ;;  %p1764_p8 = scmp.lt.s32.totalorder %s30_s17, %s1977_s2 }
  0x17   :  { %p1762_p7 = scmp.ne.s32.totalorder %s30_s17, %s1761_s18  ;;  %p1765_p9 = scmp.lt.s32.totalorder %s1763_s21, %s1761_s18 }
  0x19   :  { %p1766_p10 = por %p1765_p9, %p1764_p8 }
  0x1b   :  { %p1767_p11 = pnand %p1766_p10, %p1762_p7 }
  0x1d   :  { %1770 = shalt.err (!%p1767_p11)
}
  0x1e   :  { %s1771_s24 = scalar_lea.vmem %s32_s8, 4096  ;;  %p1776_p13 = scmp.lt.s32.totalorder %s32_s8, %s32_s8 }
  0x1f   :  { %p1772_p12 = scmp.ne.s32.totalorder %s32_s8, %s1771_s24  ;;  %p1777_p0 = scmp.lt.s32.totalorder %s1771_s24, %s1771_s24 }
  0x21   :  { %p1778_p1 = por %p1777_p0, %p1776_p13 }
  0x23   :  { %p1779_p2 = pnand %p1778_p1, %p1772_p12 }
  0x25   :  { %1782 = shalt.err (!%p1779_p2)
}
  0x26   :  { %s1834_s25 = smov 128   ;;  %s1835_s26 = smov 8  }
  0x27   :  { %37 = dma.hbm_to_vmem [thread:$0]  %s30_s17, 4096, %s32_s8, [#allocation7], %s1834_s25, %s1834_s25, %s1835_s26  }
  0x28   :  { %s1791_s29 = scalar_lea.vmem %s1888_s12, 1024  ;;  %p1796_p4 = scmp.lt.s32.totalorder %s1888_s12, %s1888_s12 }
  0x29   :  { %p1792_p3 = scmp.ne.s32.totalorder %s1888_s12, %s1791_s29  ;;  %p1797_p5 = scmp.lt.s32.totalorder %s1791_s29, %s1791_s29 }
  0x2b   :  { %p1798_p6 = por %p1797_p5, %p1796_p4 }
  0x2d   :  { %p1799_p7 = pnand %p1798_p6, %p1792_p3 }
  0x2f   :  { %1802 = shalt.err (!%p1799_p7)
}
  0x30   :  { %61 = dma.hbm_to_vmem [thread:$0]  %s1979_s4, 1024, %s1888_s12, [#allocation10], %s1830_s27, %s1830_s27, %s1831_s28  }
  0x31   :  { %1823 = dma.done.wait [#allocation7], 4096  }
  0x32   :  { %1824 = vsyncadd [#allocation7], 4294963200 }
  0x33   :  { %1825 = dma.done.wait [#allocation10], 3072  }
  0x34   :  { %1826 = vsyncadd [#allocation10], 4294964224  ;;  %p1241_p8 = scmp.le.s32.totalorder %s1975_s0, 0  ;;  %p1242_p9 = scmp.gt.s32.totalorder %s1976_s1, 0  ;;  %v1836_v0 = vmov 0.0  }
  0x35   :  { %86 = vst [vmem:[#allocation2 + $0xb0] sm:$0xff] %v1836_v0  ;;  %87 = vst [vmem:[#allocation2] sm:$0xff] %v1836_v0 }
  0x36   :  { %88 = vst [vmem:[#allocation2 + $0xd8] sm:$0xff] %v1836_v0  ;;  %89 = vst [vmem:[#allocation2 + $0x18] sm:$0xff] %v1836_v0  ;;  %p122_p10 = pnand %p1242_p9, %p1241_p8 }
  0x37   :  { %90 = vst [vmem:[#allocation2 + $0x50] sm:$0xff] %v1836_v0  ;;  %91 = vst [vmem:[#allocation2 + $0x68] sm:$0xff] %v1836_v0 }
  0x38   :  { %92 = vst [vmem:[#allocation2 + $0x30] sm:$0xff] %v1836_v0  ;;  %93 = vst [vmem:[#allocation2 + $0x48] sm:$0xff] %v1836_v0 }
  0x39   :  { %94 = vst [vmem:[#allocation2 + $0x80] sm:$0xff] %v1836_v0  ;;  %95 = vst [vmem:[#allocation2 + $0x88] sm:$0xff] %v1836_v0 }
  0x3a   :  { %96 = vst [vmem:[#allocation2 + $0xe8] sm:$0xff] %v1836_v0  ;;  %97 = vst [vmem:[#allocation2 + $0xb8] sm:$0xff] %v1836_v0 }
  0x3b   :  { %98 = vst [vmem:[#allocation2 + $0x60] sm:$0xff] %v1836_v0  ;;  %99 = vst [vmem:[#allocation2 + $0xf0] sm:$0xff] %v1836_v0 }
  0x3c   :  { %100 = vst [vmem:[#allocation2 + $0x8] sm:$0xff] %v1836_v0  ;;  %101 = vst [vmem:[#allocation2 + $0x78] sm:$0xff] %v1836_v0 }
  0x3d   :  { %102 = vst [vmem:[#allocation2 + $0x38] sm:$0xff] %v1836_v0  ;;  %103 = vst [vmem:[#allocation2 + $0x58] sm:$0xff] %v1836_v0 }
  0x3e   :  { %104 = vst [vmem:[#allocation2 + $0x40] sm:$0xff] %v1836_v0  ;;  %105 = vst [vmem:[#allocation2 + $0xc8] sm:$0xff] %v1836_v0 }
  0x3f   :  { %106 = vst [vmem:[#allocation2 + $0xe0] sm:$0xff] %v1836_v0  ;;  %107 = vst [vmem:[#allocation2 + $0x90] sm:$0xff] %v1836_v0 }
  0x40   :  { %108 = vst [vmem:[#allocation2 + $0x70] sm:$0xff] %v1836_v0  ;;  %109 = vst [vmem:[#allocation2 + $0xc0] sm:$0xff] %v1836_v0  ;;  %125 = sbr.rel (%p122_p10) target bundleno = 681 (0x2a9), region = 37 }
  0x41   :  { %110 = vst [vmem:[#allocation2 + $0xa8] sm:$0xff] %v1836_v0  ;;  %111 = vst [vmem:[#allocation2 + $0xd0] sm:$0xff] %v1836_v0 }
  0x42   :  { %112 = vst [vmem:[#allocation2 + $0x10] sm:$0xff] %v1836_v0  ;;  %113 = vst [vmem:[#allocation2 + $0x28] sm:$0xff] %v1836_v0 }
  0x43   :  { %114 = vst [vmem:[#allocation2 + $0xa0] sm:$0xff] %v1836_v0  ;;  %115 = vst [vmem:[#allocation2 + $0xf8] sm:$0xff] %v1836_v0 }
  0x44   :  { %116 = vst [vmem:[#allocation2 + $0x20] sm:$0xff] %v1836_v0  ;;  %117 = vst [vmem:[#allocation2 + $0x98] sm:$0xff] %v1836_v0 }
  0x45   :  { %v1669_v1 = vld [vmem:[#allocation11 + $0x38] sm:$0xff]   ;;  %v1670_v2 = vld [vmem:[#allocation11 + $0x30] sm:$0xff]   ;;  %v1671_v3 = vld [vmem:[#allocation11 + $0x28] sm:$0xff]  }
  0x46   :  { %1596 = vmatprep.subr.bf16.mxu0 %v1669_v1  ;;  %v1672_v4 = vld [vmem:[#allocation11 + $0x20] sm:$0xff]   ;;  %v1673_v6 = vld [vmem:[#allocation11 + $0x18] sm:$0xff]   ;;  %v1674_v7 = vld [vmem:[#allocation11 + $0x10] sm:$0xff]  }
  0x47   :  { %1597 = vmatpush3.bf16.msra.mxu0 %v1669_v1  ;;  %v1677_v5 = vld [vmem:[#allocation9] sm:$0xff]   ;;  %v1675_v8 = vld [vmem:[#allocation11 + $0x8] sm:$0xff]   ;;  %v1679_v11 = vld [vmem:[#allocation9 + $0x10] sm:$0xff]  }
  0x48   :  { %1598 = vmatprep.subr.bf16.mxu0 %v1670_v2  ;;  %1612 = vmatprep.mubr.bf16.mxu0 %v1677_v5  ;;  %v1676_v9 = vld [vmem:[#allocation11] sm:$0xff]   ;;  %v1678_v10 = vld [vmem:[#allocation9 + $0x8] sm:$0xff]   ;;  %v1680_v12 = vld [vmem:[#allocation9 + $0x18] sm:$0xff]  }
  0x49   :  { %v1681_v13 = vld [vmem:[#allocation9 + $0x20] sm:$0xff]   ;;  %v1682_v14 = vld [vmem:[#allocation9 + $0x28] sm:$0xff]   ;;  %v1683_v15 = vld [vmem:[#allocation9 + $0x30] sm:$0xff]  }
  0x4a   :  { %v1684_v16 = vld [vmem:[#allocation9 + $0x38] sm:$0xff]   ;;  %v1685_v17 = vld [vmem:[#allocation9 + $0x40] sm:$0xff]   ;;  %v1686_v18 = vld [vmem:[#allocation9 + $0x48] sm:$0xff]  }
  0x4b   :  { %1599 = vmatpush3.bf16.msra.mxu0 %v1670_v2  ;;  %v1687_v19 = vld [vmem:[#allocation9 + $0x50] sm:$0xff]   ;;  %v1688_v20 = vld [vmem:[#allocation9 + $0x58] sm:$0xff]   ;;  %v1689_v21 = vld [vmem:[#allocation9 + $0x60] sm:$0xff]  }
  0x4c   :  { %1600 = vmatprep.subr.bf16.mxu0 %v1671_v3  ;;  %v1690_v22 = vld [vmem:[#allocation9 + $0x68] sm:$0xff]   ;;  %v1691_v23 = vld [vmem:[#allocation9 + $0x70] sm:$0xff]   ;;  %v1692_v24 = vld [vmem:[#allocation9 + $0x78] sm:$0xff]  }
  0x4d   :  { %v1695_v25 = vld [vmem:[#allocation6 + $0x44] ss:$8 sps:$4 sm:$0xff]  }
  0x4e   :  { %788 = vmatprep.mubr.bf16.mxu1 %v1695_v25  ;;  %v1719_v42 = vld [vmem:[#allocation6 + $0x4] ss:$8 sps:$4 sm:$0xff]  }
  0x4f   :  { %1601 = vmatpush3.bf16.msra.mxu0 %v1671_v3  ;;  %v1705_v25 = vld [vmem:[#allocation6 + $0x84] ss:$8 sps:$4 sm:$0xff]  }
  0x50   :  { %1602 = vmatprep.subr.bf16.mxu0 %v1672_v4 }
  0x53   :  { %1603 = vmatpush3.bf16.msra.mxu0 %v1672_v4 }
  0x54   :  { %1604 = vmatprep.subr.bf16.mxu0 %v1673_v6 }
  0x57   :  { %1605 = vmatpush3.bf16.msra.mxu0 %v1673_v6 }
  0x58   :  { %1606 = vmatprep.subr.bf16.mxu0 %v1674_v7 }
  0x5b   :  { %1607 = vmatpush3.bf16.msra.mxu0 %v1674_v7 }
  0x5c   :  { %1608 = vmatprep.subr.bf16.mxu0 %v1675_v8 }
  0x5f   :  { %1609 = vmatpush3.bf16.msra.mxu0 %v1675_v8 }
  0x60   :  { %1610 = vmatprep.subr.bf16.mxu0 %v1676_v9 }
  0x63   :  { %1611 = vmatpush3.bf16.msra.mxu0 %v1676_v9 }
  0x66   :  { %1613 = vmatmul.mubr.bf16.vlgmr.msra.gmra.mxu0 %v1678_v10 }
  0x67   :  { %1616 = vmatprep.mubr.bf16.mxu0 %v1679_v11  ;;  %v1693_v11 = vld [vmem:[#allocation6 + $0x40] ss:$8 sps:$4 sm:$0xff]  }
  0x6e   :  { %1617 = vmatmul.mubr.bf16.gmra.mxu0 %v1680_v12  ;;  %v1717_v12 = vld [vmem:[#allocation6] ss:$8 sps:$4 sm:$0xff]  }
  0x6f   :  { %1620 = vmatprep.mubr.bf16.mxu0 %v1681_v13  ;;  %v1696_v13 = vld [vmem:[#allocation6 + $0x54] ss:$8 sps:$4 sm:$0xff]  }
  0x76   :  { %1621 = vmatmul.mubr.bf16.gmra.mxu0 %v1682_v14  ;;  %v1723_v14 = vld [vmem:[#allocation6 + $0x14] ss:$8 sps:$4 sm:$0xff]  }
  0x77   :  { %1624 = vmatprep.mubr.bf16.mxu0 %v1683_v15  ;;  %v1698_v15 = vld [vmem:[#allocation6 + $0x50] ss:$8 sps:$4 sm:$0xff]  }
  0x7e   :  { %1625 = vmatmul.mubr.bf16.gmra.mxu0 %v1684_v16  ;;  %v1725_v16 = vld [vmem:[#allocation6 + $0x10] ss:$8 sps:$4 sm:$0xff]  }
  0x7f   :  { %1628 = vmatprep.mubr.bf16.mxu0 %v1685_v17  ;;  %v1699_v17 = vld [vmem:[#allocation6 + $0x64] ss:$8 sps:$4 sm:$0xff]  }
  0x86   :  { %1629 = vmatmul.mubr.bf16.gmra.mxu0 %v1686_v18  ;;  %v1729_v18 = vld [vmem:[#allocation6 + $0x24] ss:$8 sps:$4 sm:$0xff]  }
  0x87   :  { %1632 = vmatprep.mubr.bf16.mxu0 %v1687_v19  ;;  %v1701_v19 = vld [vmem:[#allocation6 + $0x60] ss:$8 sps:$4 sm:$0xff]  }
  0x8e   :  { %1633 = vmatmul.mubr.bf16.gmra.mxu0 %v1688_v20  ;;  %v1731_v20 = vld [vmem:[#allocation6 + $0x20] ss:$8 sps:$4 sm:$0xff]  }
  0x8f   :  { %1636 = vmatprep.mubr.bf16.mxu0 %v1689_v21  ;;  %v1702_v21 = vld [vmem:[#allocation6 + $0x74] ss:$8 sps:$4 sm:$0xff]  }
  0x96   :  { %1637 = vmatmul.mubr.bf16.gmra.mxu0 %v1690_v22  ;;  %v1735_v22 = vld [vmem:[#allocation6 + $0x34] ss:$8 sps:$4 sm:$0xff]  }
  0x97   :  { %1640 = vmatprep.mubr.bf16.mxu0 %v1691_v23  ;;  %v1704_v23 = vld [vmem:[#allocation6 + $0x70] ss:$8 sps:$4 sm:$0xff]  }
  0x9e   :  { %1641 = vmatmul.mubr.bf16.gmra.mxu0 %v1692_v24  ;;  %v1737_v24 = vld [vmem:[#allocation6 + $0x30] ss:$8 sps:$4 sm:$0xff]  }
  0x9f   :  { %756 = vmatprep.mubr.bf16.mxu0 %v1719_v42 }
 0x126   :  { %v1614_v26 = vpop.f32.mrf.mxu0 }
 0x128   :  { %v357_v27 = vpop.f32.mrf.mxu0 }
 0x12a   :  { %v1615_v28 = vpop.f32.mrf.mxu0 }
 0x12b   :  { %v1924_v29 = vpack.c.bf16 %v1615_v28, %v1614_v26  ;;  %v1707_v26 = vld [vmem:[#allocation6 + $0x80] ss:$8 sps:$4 sm:$0xff]   ;;  %v1710_v28 = vld [vmem:[#allocation6 + $0x90] ss:$8 sps:$4 sm:$0xff]  }
 0x12c   :  { %v360_v30 = vpop.f32.mrf.mxu0 }
 0x12d   :  { %v1926_v31 = vpack.c.bf16 %v360_v30, %v357_v27  ;;  %v1708_v27 = vld [vmem:[#allocation6 + $0x94] ss:$8 sps:$4 sm:$0xff]   ;;  %v1713_v30 = vld [vmem:[#allocation6 + $0xa0] ss:$8 sps:$4 sm:$0xff]  }
 0x12e   :  { %v1618_v32 = vpop.f32.mrf.mxu0 }
 0x130   :  { %v373_v33 = vpop.f32.mrf.mxu0 }
 0x132   :  { %v1619_v34 = vpop.f32.mrf.mxu0 }
 0x133   :  { %v487_v35 = vpack.c.bf16 %v1619_v34, %v1618_v32  ;;  %v1716_v32 = vld [vmem:[#allocation6 + $0xb0] ss:$8 sps:$4 sm:$0xff]   ;;  %v1722_v34 = vld [vmem:[#allocation6 + $0xc0] ss:$8 sps:$4 sm:$0xff]  }
 0x134   :  { %v376_v36 = vpop.f32.mrf.mxu0 }
 0x135   :  { %v486_v37 = vpack.c.bf16 %v376_v36, %v373_v33  ;;  %v1720_v33 = vld [vmem:[#allocation6 + $0xc4] ss:$8 sps:$4 sm:$0xff]   ;;  %v1728_v36 = vld [vmem:[#allocation6 + $0xd0] ss:$8 sps:$4 sm:$0xff]  }
 0x136   :  { %v1622_v38 = vpop.f32.mrf.mxu0 }
 0x138   :  { %v389_v39 = vpop.f32.mrf.mxu0 }
 0x13a   :  { %v1623_v40 = vpop.f32.mrf.mxu0 }
 0x13b   :  { %v489_v4 = vpack.c.bf16 %v1623_v40, %v1622_v38  ;;  %v1734_v38 = vld [vmem:[#allocation6 + $0xe0] ss:$8 sps:$4 sm:$0xff]   ;;  %v1740_v40 = vld [vmem:[#allocation6 + $0xf0] ss:$8 sps:$4 sm:$0xff]  }
 0x13c   :  { %v392_v41 = vpop.f32.mrf.mxu0 }
 0x13d   :  { %v488_v6 = vpack.c.bf16 %v392_v41, %v389_v39  ;;  %v1738_v39 = vld [vmem:[#allocation6 + $0xf4] ss:$8 sps:$4 sm:$0xff]  }
 0x13e   :  { %v1626_v43 = vpop.f32.mrf.mxu0 }
 0x140   :  { %v405_v44 = vpop.f32.mrf.mxu0 }
 0x142   :  { %v1627_v45 = vpop.f32.mrf.mxu0 }
 0x143   :  { %v491_v63 = vpack.c.bf16 %v1627_v45, %v1626_v43  ;;  %v508_v43 = vld [vmem:[#allocation2 + $0x80] sm:$0xff]  ;;  %v500_v45 = vld [vmem:[#allocation2 + $0xb0] sm:$0xff] }
 0x144   :  { %v408_v46 = vpop.f32.mrf.mxu0 }
 0x145   :  { %v490_v2 = vpack.c.bf16 %v408_v46, %v405_v44 }
 0x146   :  { %v1630_v47 = vpop.f32.mrf.mxu0 }
 0x148   :  { %v421_v48 = vpop.f32.mrf.mxu0 }
 0x14a   :  { %v1631_v49 = vpop.f32.mrf.mxu0 }
 0x14b   :  { %v493_v9 = vpack.c.bf16 %v1631_v49, %v1630_v47 }
 0x14c   :  { %v424_v50 = vpop.f32.mrf.mxu0 }
 0x14d   :  { %v492_v10 = vpack.c.bf16 %v424_v50, %v421_v48 }
 0x14e   :  { %v1634_v51 = vpop.f32.mrf.mxu0 }
 0x150   :  { %v437_v52 = vpop.f32.mrf.mxu0 }
 0x152   :  { %v1635_v53 = vpop.f32.mrf.mxu0 }
 0x153   :  { %v495_v7 = vpack.c.bf16 %v1635_v53, %v1634_v51  ;;  %v509_v53 = vld [vmem:[#allocation2 + $0x88] sm:$0xff] }
 0x154   :  { %v440_v54 = vpop.f32.mrf.mxu0 }
 0x155   :  { %v494_v8 = vpack.c.bf16 %v440_v54, %v437_v52 }
 0x156   :  { %v1638_v55 = vpop.f32.mrf.mxu0 }
 0x158   :  { %v453_v56 = vpop.f32.mrf.mxu0 }
 0x15a   :  { %v1639_v57 = vpop.f32.mrf.mxu0 }
 0x15b   :  { %v497_v3 = vpack.c.bf16 %v1639_v57, %v1638_v55  ;;  %v501_v55 = vld [vmem:[#allocation2] sm:$0xff] }
 0x15c   :  { %v456_v58 = vpop.f32.mrf.mxu0 }
 0x15d   :  { %v496_v5 = vpack.c.bf16 %v456_v58, %v453_v56 }
 0x15e   :  { %v1642_v59 = vpop.f32.mrf.mxu0 }
 0x160   :  { %v469_v60 = vpop.f32.mrf.mxu0 }
 0x162   :  { %v1643_v61 = vpop.f32.mrf.mxu0 }
 0x163   :  { %v499_v62 = vpack.c.bf16 %v1643_v61, %v1642_v59 }
 0x164   :  { %v472_v0 = vpop.f32.mrf.mxu0 }
 0x165   :  { %v498_v1 = vpack.c.bf16 %v472_v0, %v469_v60  ;;  %1484 = vmatprep.subr.bf16.mxu0 %v499_v62  ;;  %1644 = vmatprep.subr.bf16.mxu1 %v499_v62 }
 0x166   :  { %1485 = vmatpush3.bf16.msra.mxu0 %v491_v63  ;;  %1652 = vmatpush3.bf16.msra.mxu1 %v491_v63  ;;  %v510_v63 = vld [vmem:[#allocation2 + $0xe8] sm:$0xff] }
 0x167   :  { %1486 = vmatprep.subr.bf16.mxu0 %v498_v1  ;;  %1645 = vmatprep.subr.bf16.mxu1 %v498_v1  ;;  %v502_v1 = vld [vmem:[#allocation2 + $0xd8] sm:$0xff] }
 0x16a   :  { %1487 = vmatpush3.bf16.msra.mxu0 %v490_v2  ;;  %1653 = vmatpush3.bf16.msra.mxu1 %v490_v2 }
 0x16b   :  { %1488 = vmatprep.subr.bf16.mxu0 %v497_v3  ;;  %1646 = vmatprep.subr.bf16.mxu1 %v497_v3 }
 0x16e   :  { %1489 = vmatpush3.bf16.msra.mxu0 %v489_v4  ;;  %1654 = vmatpush3.bf16.msra.mxu1 %v489_v4 }
 0x16f   :  { %1490 = vmatprep.subr.bf16.mxu0 %v496_v5  ;;  %1647 = vmatprep.subr.bf16.mxu1 %v496_v5 }
 0x172   :  { %1491 = vmatpush3.bf16.msra.mxu0 %v488_v6  ;;  %1655 = vmatpush3.bf16.msra.mxu1 %v488_v6 }
 0x173   :  { %1492 = vmatprep.subr.bf16.mxu0 %v495_v7  ;;  %1648 = vmatprep.subr.bf16.mxu1 %v495_v7 }
 0x176   :  { %1493 = vmatpush3.bf16.msra.mxu0 %v487_v35  ;;  %1656 = vmatpush3.bf16.msra.mxu1 %v487_v35  ;;  %v1726_v35 = vld [vmem:[#allocation6 + $0xd4] ss:$8 sps:$4 sm:$0xff]  }
 0x177   :  { %1494 = vmatprep.subr.bf16.mxu0 %v494_v8  ;;  %1649 = vmatprep.subr.bf16.mxu1 %v494_v8 }
 0x17a   :  { %1495 = vmatpush3.bf16.msra.mxu0 %v486_v37  ;;  %1657 = vmatpush3.bf16.msra.mxu1 %v486_v37  ;;  %v1732_v37 = vld [vmem:[#allocation6 + $0xe4] ss:$8 sps:$4 sm:$0xff]  }
 0x17b   :  { %1496 = vmatprep.subr.bf16.mxu0 %v493_v9  ;;  %1650 = vmatprep.subr.bf16.mxu1 %v493_v9  ;;  %v511_v9 = vld [vmem:[#allocation2 + $0xb8] sm:$0xff] }
 0x17e   :  { %1497 = vmatpush3.bf16.msra.mxu0 %v1924_v29  ;;  %1658 = vmatpush3.bf16.msra.mxu1 %v1924_v29  ;;  %v1711_v29 = vld [vmem:[#allocation6 + $0xa4] ss:$8 sps:$4 sm:$0xff]  }
 0x17f   :  { %1498 = vmatprep.subr.bf16.mxu0 %v492_v10  ;;  %1651 = vmatprep.subr.bf16.mxu1 %v492_v10 }
 0x182   :  { %1499 = vmatpush3.bf16.msra.mxu0 %v1926_v31  ;;  %1659 = vmatpush3.bf16.msra.mxu1 %v1926_v31  ;;  %v1714_v31 = vld [vmem:[#allocation6 + $0xb4] ss:$8 sps:$4 sm:$0xff]  }
 0x185   :  { %789 = vmatmul.mubr.bf16.vlgmr.msra.gmra.mxu1 %v1693_v11  ;;  %757 = vmatmul.mubr.bf16.vlgmr.msra.gmra.mxu0 %v1717_v12  ;;  %v503_v11 = vld [vmem:[#allocation2 + $0x18] sm:$0xff] }
 0x186   :  { %796 = vmatprep.mubr.bf16.mxu1 %v1696_v13  ;;  %764 = vmatprep.mubr.bf16.mxu0 %v1723_v14 }
 0x18d   :  { %797 = vmatmul.mubr.bf16.gmra.mxu1 %v1698_v15  ;;  %765 = vmatmul.mubr.bf16.gmra.mxu0 %v1725_v16 }
 0x18e   :  { %804 = vmatprep.mubr.bf16.mxu1 %v1699_v17  ;;  %772 = vmatprep.mubr.bf16.mxu0 %v1729_v18 }
 0x195   :  { %805 = vmatmul.mubr.bf16.gmra.mxu1 %v1701_v19  ;;  %773 = vmatmul.mubr.bf16.gmra.mxu0 %v1731_v20  ;;  %v512_v19 = vld [vmem:[#allocation2 + $0x60] sm:$0xff] }
 0x196   :  { %812 = vmatprep.mubr.bf16.mxu1 %v1702_v21  ;;  %780 = vmatprep.mubr.bf16.mxu0 %v1735_v22  ;;  %v504_v21 = vld [vmem:[#allocation2 + $0x50] sm:$0xff] }
 0x19d   :  { %813 = vmatmul.mubr.bf16.gmra.mxu1 %v1704_v23  ;;  %781 = vmatmul.mubr.bf16.gmra.mxu0 %v1737_v24 }
 0x19e   :  { %820 = vmatprep.mubr.bf16.mxu1 %v1705_v25 }
 0x1a5   :  { %821 = vmatmul.mubr.bf16.gmra.mxu1 %v1707_v26 }
 0x1a6   :  { %828 = vmatprep.mubr.bf16.mxu1 %v1708_v27 }
 0x1ad   :  { %829 = vmatmul.mubr.bf16.gmra.mxu1 %v1710_v28 }
 0x1ae   :  { %836 = vmatprep.mubr.bf16.mxu1 %v1711_v29  ;;  %v513_v29 = vld [vmem:[#allocation2 + $0xf0] sm:$0xff] }
 0x1b5   :  { %837 = vmatmul.mubr.bf16.gmra.mxu1 %v1713_v30 }
 0x1b6   :  { %844 = vmatprep.mubr.bf16.mxu1 %v1714_v31  ;;  %v505_v31 = vld [vmem:[#allocation2 + $0x68] sm:$0xff] }
 0x1bd   :  { %845 = vmatmul.mubr.bf16.gmra.mxu1 %v1716_v32 }
 0x1be   :  { %852 = vmatprep.mubr.bf16.mxu1 %v1720_v33 }
 0x1c5   :  { %853 = vmatmul.mubr.bf16.gmra.mxu1 %v1722_v34 }
 0x1c6   :  { %860 = vmatprep.mubr.bf16.mxu1 %v1726_v35 }
 0x1cd   :  { %861 = vmatmul.mubr.bf16.gmra.mxu1 %v1728_v36 }
 0x1ce   :  { %868 = vmatprep.mubr.bf16.mxu1 %v1732_v37 }
 0x1d5   :  { %869 = vmatmul.mubr.bf16.gmra.mxu1 %v1734_v38 }
 0x1d6   :  { %876 = vmatprep.mubr.bf16.mxu1 %v1738_v39  ;;  %v514_v39 = vld [vmem:[#allocation2 + $0x8] sm:$0xff] }
 0x1dd   :  { %877 = vmatmul.mubr.bf16.gmra.mxu1 %v1740_v40 }
 0x245   :  { %v1524_v41 = vpop.f32.mrf.mxu1  ;;  %v1500_v42 = vpop.f32.mrf.mxu0 }
 0x247   :  { %v1525_v44 = vpop.f32.mrf.mxu1  ;;  %v1501_v46 = vpop.f32.mrf.mxu0 }
 0x248   :  { %v1526_v47 = vadd.f32 %v1525_v44, %v1524_v41  ;;  %v1502_v48 = vadd.f32 %v1501_v46, %v1500_v42  ;;  %v506_v41 = vld [vmem:[#allocation2 + $0x30] sm:$0xff] }
 0x249   :  { %v1527_v49 = vpop.f32.mrf.mxu1  ;;  %v1503_v50 = vpop.f32.mrf.mxu0 }
 0x24a   :  { %v893_v51 = vadd.f32 %v1526_v47, %v508_v43  ;;  %v885_v52 = vadd.f32 %v1502_v48, %v500_v45 }
 0x24b   :  { %v1528_v54 = vpop.f32.mrf.mxu1  ;;  %v1504_v56 = vpop.f32.mrf.mxu0 }
 0x24c   :  { %925 = vst [vmem:[#allocation2 + $0x80] sm:$0xff] %v893_v51  ;;  %v1529_v57 = vadd.f32 %v1528_v54, %v1527_v49  ;;  %917 = vst [vmem:[#allocation2 + $0xb0] sm:$0xff] %v885_v52  ;;  %v1505_v58 = vadd.f32 %v1504_v56, %v1503_v50  ;;  %v515_v49 = vld [vmem:[#allocation2 + $0x78] sm:$0xff]  ;;  %v507_v51 = vld [vmem:[#allocation2 + $0x48] sm:$0xff] }
 0x24d   :  { %v1530_v59 = vpop.f32.mrf.mxu1  ;;  %v1506_v60 = vpop.f32.mrf.mxu0 }
 0x24e   :  { %v894_v61 = vadd.f32 %v1529_v57, %v509_v53  ;;  %v886_v62 = vadd.f32 %v1505_v58, %v501_v55  ;;  %v516_v58 = vld [vmem:[#allocation2 + $0x38] sm:$0xff] }
 0x24f   :  { %v1531_v0 = vpop.f32.mrf.mxu1  ;;  %v1507_v2 = vpop.f32.mrf.mxu0 }
 0x250   :  { %926 = vst [vmem:[#allocation2 + $0x88] sm:$0xff] %v894_v61  ;;  %v1532_v3 = vadd.f32 %v1531_v0, %v1530_v59  ;;  %918 = vst [vmem:[#allocation2] sm:$0xff] %v886_v62  ;;  %v1508_v4 = vadd.f32 %v1507_v2, %v1506_v60 }
 0x251   :  { %v1533_v5 = vpop.f32.mrf.mxu1  ;;  %v1509_v6 = vpop.f32.mrf.mxu0 }
 0x252   :  { %v895_v7 = vadd.f32 %v1532_v3, %v510_v63  ;;  %v887_v8 = vadd.f32 %v1508_v4, %v502_v1  ;;  %v517_v63 = vld [vmem:[#allocation2 + $0x58] sm:$0xff]  ;;  %v518_v4 = vld [vmem:[#allocation2 + $0x40] sm:$0xff] }
 0x253   :  { %v1534_v10 = vpop.f32.mrf.mxu1  ;;  %v1510_v12 = vpop.f32.mrf.mxu0 }
 0x254   :  { %927 = vst [vmem:[#allocation2 + $0xe8] sm:$0xff] %v895_v7  ;;  %v1535_v13 = vadd.f32 %v1534_v10, %v1533_v5  ;;  %919 = vst [vmem:[#allocation2 + $0xd8] sm:$0xff] %v887_v8  ;;  %v1511_v14 = vadd.f32 %v1510_v12, %v1509_v6 }
 0x255   :  { %v1536_v15 = vpop.f32.mrf.mxu1  ;;  %v1512_v16 = vpop.f32.mrf.mxu0 }
 0x256   :  { %v896_v17 = vadd.f32 %v1535_v13, %v511_v9  ;;  %v888_v18 = vadd.f32 %v1511_v14, %v503_v11  ;;  %v519_v9 = vld [vmem:[#allocation2 + $0xc8] sm:$0xff]  ;;  %v520_v14 = vld [vmem:[#allocation2 + $0xe0] sm:$0xff] }
 0x257   :  { %v1537_v20 = vpop.f32.mrf.mxu1  ;;  %v1513_v22 = vpop.f32.mrf.mxu0 }
 0x258   :  { %928 = vst [vmem:[#allocation2 + $0xb8] sm:$0xff] %v896_v17  ;;  %v1538_v23 = vadd.f32 %v1537_v20, %v1536_v15  ;;  %920 = vst [vmem:[#allocation2 + $0x18] sm:$0xff] %v888_v18  ;;  %v1514_v24 = vadd.f32 %v1513_v22, %v1512_v16 }
 0x259   :  { %v1539_v25 = vpop.f32.mrf.mxu1  ;;  %v1515_v26 = vpop.f32.mrf.mxu0 }
 0x25a   :  { %v897_v27 = vadd.f32 %v1538_v23, %v512_v19  ;;  %v889_v28 = vadd.f32 %v1514_v24, %v504_v21  ;;  %v521_v19 = vld [vmem:[#allocation2 + $0x90] sm:$0xff] }
 0x25b   :  { %v1540_v30 = vpop.f32.mrf.mxu1  ;;  %v1516_v32 = vpop.f32.mrf.mxu0  ;;  %v522_v24 = vld [vmem:[#allocation2 + $0x70] sm:$0xff] }
 0x25c   :  { %929 = vst [vmem:[#allocation2 + $0x60] sm:$0xff] %v897_v27  ;;  %v1541_v33 = vadd.f32 %v1540_v30, %v1539_v25  ;;  %921 = vst [vmem:[#allocation2 + $0x50] sm:$0xff] %v889_v28  ;;  %v1517_v34 = vadd.f32 %v1516_v32, %v1515_v26 }
 0x25d   :  { %v1542_v35 = vpop.f32.mrf.mxu1  ;;  %v1518_v36 = vpop.f32.mrf.mxu0 }
 0x25e   :  { %v898_v37 = vadd.f32 %v1541_v33, %v513_v29  ;;  %v890_v38 = vadd.f32 %v1517_v34, %v505_v31  ;;  %v523_v29 = vld [vmem:[#allocation2 + $0xc0] sm:$0xff]  ;;  %v524_v34 = vld [vmem:[#allocation2 + $0xa8] sm:$0xff] }
 0x25f   :  { %v1543_v40 = vpop.f32.mrf.mxu1  ;;  %v1519_v42 = vpop.f32.mrf.mxu0 }
 0x260   :  { %930 = vst [vmem:[#allocation2 + $0xf0] sm:$0xff] %v898_v37  ;;  %v1544_v43 = vadd.f32 %v1543_v40, %v1542_v35  ;;  %922 = vst [vmem:[#allocation2 + $0x68] sm:$0xff] %v890_v38  ;;  %v1520_v44 = vadd.f32 %v1519_v42, %v1518_v36 }
 0x261   :  { %v1545_v45 = vpop.f32.mrf.mxu1  ;;  %v1521_v46 = vpop.f32.mrf.mxu0 }
 0x262   :  { %v899_v47 = vadd.f32 %v1544_v43, %v514_v39  ;;  %v891_v48 = vadd.f32 %v1520_v44, %v506_v41  ;;  %v525_v39 = vld [vmem:[#allocation2 + $0xd0] sm:$0xff] }
 0x263   :  { %v1546_v50 = vpop.f32.mrf.mxu1  ;;  %v1522_v52 = vpop.f32.mrf.mxu0  ;;  %v526_v44 = vld [vmem:[#allocation2 + $0x10] sm:$0xff] }
 0x264   :  { %931 = vst [vmem:[#allocation2 + $0x8] sm:$0xff] %v899_v47  ;;  %v1547_v53 = vadd.f32 %v1546_v50, %v1545_v45  ;;  %923 = vst [vmem:[#allocation2 + $0x30] sm:$0xff] %v891_v48  ;;  %v1523_v54 = vadd.f32 %v1522_v52, %v1521_v46 }
 0x265   :  { %v1548_v55 = vpop.f32.mrf.mxu1 }
 0x266   :  { %v900_v56 = vadd.f32 %v1547_v53, %v515_v49  ;;  %v892_v57 = vadd.f32 %v1523_v54, %v507_v51  ;;  %v527_v49 = vld [vmem:[#allocation2 + $0x28] sm:$0xff]  ;;  %v528_v54 = vld [vmem:[#allocation2 + $0xa0] sm:$0xff] }
 0x267   :  { %v1549_v59 = vpop.f32.mrf.mxu1 }
 0x268   :  { %932 = vst [vmem:[#allocation2 + $0x78] sm:$0xff] %v900_v56  ;;  %v1550_v60 = vadd.f32 %v1549_v59, %v1548_v55  ;;  %924 = vst [vmem:[#allocation2 + $0x48] sm:$0xff] %v892_v57  ;;  %v529_v59 = vld [vmem:[#allocation2 + $0xf8] sm:$0xff] }
 0x269   :  { %v1551_v61 = vpop.f32.mrf.mxu1 }
 0x26a   :  { %v901_v62 = vadd.f32 %v1550_v60, %v516_v58 }
 0x26b   :  { %v1552_v0 = vpop.f32.mrf.mxu1 }
 0x26c   :  { %933 = vst [vmem:[#allocation2 + $0x38] sm:$0xff] %v901_v62  ;;  %v1553_v1 = vadd.f32 %v1552_v0, %v1551_v61  ;;  %v530_v0 = vld [vmem:[#allocation2 + $0x20] sm:$0xff] }
 0x26d   :  { %v1554_v2 = vpop.f32.mrf.mxu1 }
 0x26e   :  { %v902_v3 = vadd.f32 %v1553_v1, %v517_v63 }
 0x26f   :  { %v1555_v5 = vpop.f32.mrf.mxu1 }
 0x270   :  { %934 = vst [vmem:[#allocation2 + $0x58] sm:$0xff] %v902_v3  ;;  %v1556_v6 = vadd.f32 %v1555_v5, %v1554_v2  ;;  %v531_v5 = vld [vmem:[#allocation2 + $0x98] sm:$0xff] }
 0x271   :  { %v1557_v7 = vpop.f32.mrf.mxu1 }
 0x272   :  { %v903_v8 = vadd.f32 %v1556_v6, %v518_v4 }
 0x273   :  { %v1558_v10 = vpop.f32.mrf.mxu1 }
 0x274   :  { %935 = vst [vmem:[#allocation2 + $0x40] sm:$0xff] %v903_v8  ;;  %v1559_v11 = vadd.f32 %v1558_v10, %v1557_v7 }
 0x275   :  { %v1560_v12 = vpop.f32.mrf.mxu1 }
 0x276   :  { %v904_v13 = vadd.f32 %v1559_v11, %v519_v9 }
 0x277   :  { %v1561_v15 = vpop.f32.mrf.mxu1 }
 0x278   :  { %936 = vst [vmem:[#allocation2 + $0xc8] sm:$0xff] %v904_v13  ;;  %v1562_v16 = vadd.f32 %v1561_v15, %v1560_v12 }
 0x279   :  { %v1563_v17 = vpop.f32.mrf.mxu1 }
 0x27a   :  { %v905_v18 = vadd.f32 %v1562_v16, %v520_v14 }
 0x27b   :  { %v1564_v20 = vpop.f32.mrf.mxu1 }
 0x27c   :  { %937 = vst [vmem:[#allocation2 + $0xe0] sm:$0xff] %v905_v18  ;;  %v1565_v21 = vadd.f32 %v1564_v20, %v1563_v17 }
 0x27d   :  { %v1566_v22 = vpop.f32.mrf.mxu1 }
 0x27e   :  { %v906_v23 = vadd.f32 %v1565_v21, %v521_v19 }
 0x27f   :  { %v1567_v25 = vpop.f32.mrf.mxu1 }
 0x280   :  { %938 = vst [vmem:[#allocation2 + $0x90] sm:$0xff] %v906_v23  ;;  %v1568_v26 = vadd.f32 %v1567_v25, %v1566_v22 }
 0x281   :  { %v1569_v27 = vpop.f32.mrf.mxu1 }
 0x282   :  { %v907_v28 = vadd.f32 %v1568_v26, %v522_v24 }
 0x283   :  { %v1570_v30 = vpop.f32.mrf.mxu1 }
 0x284   :  { %939 = vst [vmem:[#allocation2 + $0x70] sm:$0xff] %v907_v28  ;;  %v1571_v31 = vadd.f32 %v1570_v30, %v1569_v27 }
 0x285   :  { %v1572_v32 = vpop.f32.mrf.mxu1 }
 0x286   :  { %v908_v33 = vadd.f32 %v1571_v31, %v523_v29 }
 0x287   :  { %v1573_v35 = vpop.f32.mrf.mxu1 }
 0x288   :  { %940 = vst [vmem:[#allocation2 + $0xc0] sm:$0xff] %v908_v33  ;;  %v1574_v36 = vadd.f32 %v1573_v35, %v1572_v32 }
 0x289   :  { %v1575_v37 = vpop.f32.mrf.mxu1 }
 0x28a   :  { %v909_v38 = vadd.f32 %v1574_v36, %v524_v34 }
 0x28b   :  { %v1576_v40 = vpop.f32.mrf.mxu1 }
 0x28c   :  { %941 = vst [vmem:[#allocation2 + $0xa8] sm:$0xff] %v909_v38  ;;  %v1577_v41 = vadd.f32 %v1576_v40, %v1575_v37 }
 0x28d   :  { %v1578_v42 = vpop.f32.mrf.mxu1 }
 0x28e   :  { %v910_v43 = vadd.f32 %v1577_v41, %v525_v39 }
 0x28f   :  { %v1579_v45 = vpop.f32.mrf.mxu1 }
 0x290   :  { %942 = vst [vmem:[#allocation2 + $0xd0] sm:$0xff] %v910_v43  ;;  %v1580_v46 = vadd.f32 %v1579_v45, %v1578_v42 }
 0x291   :  { %v1581_v47 = vpop.f32.mrf.mxu1 }
 0x292   :  { %v911_v48 = vadd.f32 %v1580_v46, %v526_v44 }
 0x293   :  { %v1582_v50 = vpop.f32.mrf.mxu1 }
 0x294   :  { %943 = vst [vmem:[#allocation2 + $0x10] sm:$0xff] %v911_v48  ;;  %v1583_v51 = vadd.f32 %v1582_v50, %v1581_v47 }
 0x295   :  { %v1584_v52 = vpop.f32.mrf.mxu1 }
 0x296   :  { %v912_v53 = vadd.f32 %v1583_v51, %v527_v49 }
 0x297   :  { %v1585_v55 = vpop.f32.mrf.mxu1 }
 0x298   :  { %944 = vst [vmem:[#allocation2 + $0x28] sm:$0xff] %v912_v53  ;;  %v1586_v56 = vadd.f32 %v1585_v55, %v1584_v52 }
 0x299   :  { %v1587_v57 = vpop.f32.mrf.mxu1 }
 0x29a   :  { %v913_v58 = vadd.f32 %v1586_v56, %v528_v54 }
 0x29b   :  { %v1588_v60 = vpop.f32.mrf.mxu1 }
 0x29c   :  { %945 = vst [vmem:[#allocation2 + $0xa0] sm:$0xff] %v913_v58  ;;  %v1589_v61 = vadd.f32 %v1588_v60, %v1587_v57 }
 0x29d   :  { %v1590_v62 = vpop.f32.mrf.mxu1 }
 0x29e   :  { %v914_v63 = vadd.f32 %v1589_v61, %v529_v59 }
 0x29f   :  { %v1591_v1 = vpop.f32.mrf.mxu1 }
 0x2a0   :  { %946 = vst [vmem:[#allocation2 + $0xf8] sm:$0xff] %v914_v63  ;;  %v1592_v2 = vadd.f32 %v1591_v1, %v1590_v62 }
 0x2a1   :  { %v1593_v3 = vpop.f32.mrf.mxu1 }
 0x2a2   :  { %v915_v4 = vadd.f32 %v1592_v2, %v530_v0 }
 0x2a3   :  { %v1594_v6 = vpop.f32.mrf.mxu1 }
 0x2a4   :  { %947 = vst [vmem:[#allocation2 + $0x20] sm:$0xff] %v915_v4  ;;  %v1595_v7 = vadd.f32 %v1594_v6, %v1593_v3 }
 0x2a6   :  { %v916_v8 = vadd.f32 %v1595_v7, %v531_v5 }
 0x2a8   :  { %948 = vst [vmem:[#allocation2 + $0x98] sm:$0xff] %v916_v8 }
 0x2a9 PF:  { %v952_v9 = vld [vmem:[#allocation2 + $0xb0] sm:$0xff]  ;;  %v953_v10 = vld [vmem:[#allocation2] sm:$0xff]  ;;  %v954_v14 = vld [vmem:[#allocation2 + $0xd8] sm:$0xff] }
 0x2aa   :  { %v1935_v11 = vld [vmem:[%s1980_s5] ss:$0 sm:$0xff]  ;;  %v955_v15 = vld [vmem:[#allocation2 + $0x18] sm:$0xff]  ;;  %v956_v16 = vld [vmem:[#allocation2 + $0x50] sm:$0xff]  ;;  %s1837_s5 = smov [#allocation12]  }
 0x2ab   :  { %v991_v12 = vadd.f32 %v1935_v11, %v952_v9  ;;  %v992_v13 = vadd.f32 %v1935_v11, %v953_v10  ;;  %v993_v17 = vadd.f32 %v1935_v11, %v954_v14  ;;  %v994_v18 = vadd.f32 %v1935_v11, %v955_v15  ;;  %v957_v19 = vld [vmem:[#allocation2 + $0x68] sm:$0xff]  ;;  %v958_v21 = vld [vmem:[#allocation2 + $0x30] sm:$0xff]  ;;  %v960_v27 = vld [vmem:[#allocation2 + $0x80] sm:$0xff]  ;;  %s1220_s14 = sshll.u32 %s1837_s5, 4  ;;  %s1221_s14 = int_to_ptr.vmem [resolvable:$true] %s1220_s14 }
 0x2ac   :  { %v995_v20 = vadd.f32 %v1935_v11, %v956_v16  ;;  %v959_v22 = vld [vmem:[#allocation2 + $0x48] sm:$0xff]  ;;  %v996_v25 = vadd.f32 %v1935_v11, %v957_v19  ;;  %v997_v26 = vadd.f32 %v1935_v11, %v958_v21  ;;  %v963_v34 = vld [vmem:[#allocation2 + $0xb8] sm:$0xff]  ;;  %v964_v35 = vld [vmem:[#allocation2 + $0x60] sm:$0xff]  ;;  %v999_v39 = vadd.f32 %v1935_v11, %v960_v27  ;;  %s1803_s15 = scalar_lea.vmem %s1221_s14, 2048  ;;  %p1808_p12 = scmp.lt.s32.totalorder %s1221_s14, %s1221_s14 }
 0x2ad   :  { %v1023_v23 = vmax.f32 %v991_v12, 0.0  ;;  %v1024_v24 = vmax.f32 %v992_v13, 0.0  ;;  %v961_v28 = vld [vmem:[#allocation2 + $0x88] sm:$0xff]  ;;  %v1025_v30 = vmax.f32 %v993_v17, 0.0  ;;  %v1026_v31 = vmax.f32 %v994_v18, 0.0  ;;  %v965_v40 = vld [vmem:[#allocation2 + $0xf0] sm:$0xff]  ;;  %p1804_p11 = scmp.ne.s32.totalorder %s1221_s14, %s1803_s15  ;;  %p1809_p13 = scmp.lt.s32.totalorder %s1803_s15, %s1803_s15 }
 0x2ae   :  { %v962_v29 = vld [vmem:[#allocation2 + $0xe8] sm:$0xff]  ;;  %v1027_v32 = vmax.f32 %v995_v20, 0.0  ;;  %v998_v33 = vadd.f32 %v1935_v11, %v959_v22  ;;  %v1028_v37 = vmax.f32 %v996_v25, 0.0  ;;  %v1029_v38 = vmax.f32 %v997_v26, 0.0  ;;  %v967_v46 = vld [vmem:[#allocation2 + $0x78] sm:$0xff]  ;;  %v970_v57 = vld [vmem:[#allocation2 + $0x40] sm:$0xff] }
 0x2af   :  { %v1368_v36 = vpack.c.bf16 %v1024_v24, %v1023_v23  ;;  %v1373_v41 = vpack.c.bf16 %v1026_v31, %v1025_v30  ;;  %v1000_v43 = vadd.f32 %v1935_v11, %v961_v28  ;;  %v1001_v44 = vadd.f32 %v1935_v11, %v962_v29  ;;  %v966_v45 = vld [vmem:[#allocation2 + $0x8] sm:$0xff]  ;;  %v968_v51 = vld [vmem:[#allocation2 + $0x38] sm:$0xff]  ;;  %v972_v3 = vld [vmem:[#allocation2 + $0xe0] sm:$0xff]  ;;  %p1810_p0 = por %p1809_p13, %p1808_p12 }
 0x2b0   :  { %v1030_v42 = vmax.f32 %v998_v33, 0.0  ;;  %v1378_v47 = vpack.c.bf16 %v1028_v37, %v1027_v32  ;;  %v1031_v48 = vmax.f32 %v999_v39, 0.0  ;;  %v1002_v49 = vadd.f32 %v1935_v11, %v963_v34  ;;  %v969_v52 = vld [vmem:[#allocation2 + $0x58] sm:$0xff]  ;;  %v971_v62 = vld [vmem:[#allocation2 + $0xc8] sm:$0xff]  ;;  %v973_v4 = vld [vmem:[#allocation2 + $0x90] sm:$0xff] }
 0x2b1   :  { %1369 = vst [vmem:[#allocation12] sm:$0xff] %v1368_v36   ;;  %v1003_v50 = vadd.f32 %v1935_v11, %v964_v35  ;;  %1445 = vst [vmem:[#allocation12 + $0x8] sm:$0xff] %v1373_v41   ;;  %v1032_v54 = vmax.f32 %v1000_v43, 0.0  ;;  %v1033_v55 = vmax.f32 %v1001_v44, 0.0  ;;  %v1004_v56 = vadd.f32 %v1935_v11, %v965_v40  ;;  %v974_v9 = vld [vmem:[#allocation2 + $0x70] sm:$0xff]  ;;  %v975_v10 = vld [vmem:[#allocation2 + $0xc0] sm:$0xff]  ;;  %p1811_p1 = pnand %p1810_p0, %p1804_p11 }
 0x2b2   :  { %v1383_v53 = vpack.c.bf16 %v1030_v42, %v1029_v38  ;;  %1446 = vst [vmem:[#allocation12 + $0x10] sm:$0xff] %v1378_v47   ;;  %v1034_v58 = vmax.f32 %v1002_v49, 0.0  ;;  %v1005_v60 = vadd.f32 %v1935_v11, %v966_v45  ;;  %v1006_v61 = vadd.f32 %v1935_v11, %v967_v46  ;;  %v976_v16 = vld [vmem:[#allocation2 + $0xa8] sm:$0xff]  ;;  %v977_v17 = vld [vmem:[#allocation2 + $0xd0] sm:$0xff]  ;;  %v980_v32 = vld [vmem:[#allocation2 + $0xa0] sm:$0xff] }
 0x2b3   :  { %v1035_v59 = vmax.f32 %v1003_v50, 0.0  ;;  %v1388_v63 = vpack.c.bf16 %v1032_v54, %v1031_v48  ;;  %v1036_v0 = vmax.f32 %v1004_v56, 0.0  ;;  %v1007_v1 = vadd.f32 %v1935_v11, %v968_v51  ;;  %v978_v22 = vld [vmem:[#allocation2 + $0x10] sm:$0xff]  ;;  %v979_v27 = vld [vmem:[#allocation2 + $0x28] sm:$0xff]  ;;  %v981_v33 = vld [vmem:[#allocation2 + $0xf8] sm:$0xff] }
 0x2b4   :  { %1447 = vst [vmem:[#allocation12 + $0x18] sm:$0xff] %v1383_v53   ;;  %v1008_v2 = vadd.f32 %v1935_v11, %v969_v52  ;;  %v1393_v5 = vpack.c.bf16 %v1034_v58, %v1033_v55  ;;  %v1037_v6 = vmax.f32 %v1005_v60, 0.0  ;;  %v1038_v7 = vmax.f32 %v1006_v61, 0.0  ;;  %v982_v38 = vld [vmem:[#allocation2 + $0x20] sm:$0xff]  ;;  %v983_v39 = vld [vmem:[#allocation2 + $0x98] sm:$0xff] }
 0x2b5   :  { %v1009_v8 = vadd.f32 %v1935_v11, %v970_v57  ;;  %1448 = vst [vmem:[#allocation12 + $0x20] sm:$0xff] %v1388_v63   ;;  %v1398_v12 = vpack.c.bf16 %v1036_v0, %v1035_v59  ;;  %v1039_v13 = vmax.f32 %v1007_v1, 0.0  ;;  %v1010_v15 = vadd.f32 %v1935_v11, %v971_v62 }
 0x2b6   :  { %v1040_v14 = vmax.f32 %v1008_v2, 0.0  ;;  %1449 = vst [vmem:[#allocation12 + $0x28] sm:$0xff] %v1393_v5   ;;  %v1403_v18 = vpack.c.bf16 %v1038_v7, %v1037_v6  ;;  %v1011_v20 = vadd.f32 %v1935_v11, %v972_v3  ;;  %v1012_v21 = vadd.f32 %v1935_v11, %v973_v4 }
 0x2b7   :  { %v1041_v19 = vmax.f32 %v1009_v8, 0.0  ;;  %1450 = vst [vmem:[#allocation12 + $0x30] sm:$0xff] %v1398_v12   ;;  %v1042_v24 = vmax.f32 %v1010_v15, 0.0  ;;  %v1013_v25 = vadd.f32 %v1935_v11, %v974_v9  ;;  %v1014_v26 = vadd.f32 %v1935_v11, %v975_v10 }
 0x2b8   :  { %v1408_v23 = vpack.c.bf16 %v1040_v14, %v1039_v13  ;;  %1451 = vst [vmem:[#allocation12 + $0x38] sm:$0xff] %v1403_v18   ;;  %v1043_v28 = vmax.f32 %v1011_v20, 0.0  ;;  %v1044_v29 = vmax.f32 %v1012_v21, 0.0  ;;  %v1015_v30 = vadd.f32 %v1935_v11, %v976_v16 }
 0x2b9   :  { %v1016_v31 = vadd.f32 %v1935_v11, %v977_v17  ;;  %v1413_v34 = vpack.c.bf16 %v1042_v24, %v1041_v19  ;;  %v1045_v35 = vmax.f32 %v1013_v25, 0.0  ;;  %v1046_v36 = vmax.f32 %v1014_v26, 0.0 }
 0x2ba   :  { %1452 = vst [vmem:[#allocation12 + $0x40] sm:$0xff] %v1408_v23   ;;  %v1017_v37 = vadd.f32 %v1935_v11, %v978_v22  ;;  %v1418_v40 = vpack.c.bf16 %v1044_v29, %v1043_v28  ;;  %v1047_v41 = vmax.f32 %v1015_v30, 0.0  ;;  %v1018_v43 = vadd.f32 %v1935_v11, %v979_v27 }
 0x2bb   :  { %v1048_v42 = vmax.f32 %v1016_v31, 0.0  ;;  %1453 = vst [vmem:[#allocation12 + $0x48] sm:$0xff] %v1413_v34   ;;  %v1423_v44 = vpack.c.bf16 %v1046_v36, %v1045_v35  ;;  %v1019_v46 = vadd.f32 %v1935_v11, %v980_v32  ;;  %v1020_v47 = vadd.f32 %v1935_v11, %v981_v33 }
 0x2bc   :  { %v1049_v45 = vmax.f32 %v1017_v37, 0.0  ;;  %1454 = vst [vmem:[#allocation12 + $0x50] sm:$0xff] %v1418_v40   ;;  %v1050_v49 = vmax.f32 %v1018_v43, 0.0  ;;  %v1021_v50 = vadd.f32 %v1935_v11, %v982_v38  ;;  %v1022_v51 = vadd.f32 %v1935_v11, %v983_v39 }
 0x2bd   :  { %v1428_v48 = vpack.c.bf16 %v1048_v42, %v1047_v41  ;;  %1455 = vst [vmem:[#allocation12 + $0x58] sm:$0xff] %v1423_v44   ;;  %v1051_v52 = vmax.f32 %v1019_v46, 0.0  ;;  %v1052_v53 = vmax.f32 %v1020_v47, 0.0 }
 0x2be   :  { %v1433_v54 = vpack.c.bf16 %v1050_v49, %v1049_v45  ;;  %v1053_v55 = vmax.f32 %v1021_v50, 0.0  ;;  %v1054_v56 = vmax.f32 %v1022_v51, 0.0 }
 0x2bf   :  { %1456 = vst [vmem:[#allocation12 + $0x60] sm:$0xff] %v1428_v48   ;;  %v1438_v57 = vpack.c.bf16 %v1052_v53, %v1051_v52 }
 0x2c0   :  { %1457 = vst [vmem:[#allocation12 + $0x68] sm:$0xff] %v1433_v54   ;;  %v1443_v58 = vpack.c.bf16 %v1054_v56, %v1053_v55 }
 0x2c1   :  { %1458 = vst [vmem:[#allocation12 + $0x70] sm:$0xff] %v1438_v57  }
 0x2c2   :  { %1459 = vst [vmem:[#allocation12 + $0x78] sm:$0xff] %v1443_v58  }
 0x2c3   :  { %1814 = shalt.err (!%p1811_p1)
}
 0x2c4   :  { %1226 = dma.vmem_to_hbm [thread:$0]  %s1221_s14, 2048, %s1981_s6, [#allocation8], %s1830_s27, %s1830_s27, %s1831_s28  }
 0x2c5   :  { %1827 = dma.done.wait [#allocation8], 2048  }
 0x2c6   :  { %1828 = vsyncadd [#allocation8], 4294965248 }
 0x2c7   :  { %1230 = vsyncpa [#allocation7], 1 }
 0x2c8   :  { %1231 = vsyncpa [#allocation10], 1 }
 0x2c9   :  { %1232 = vsyncpa [#allocation8], 1 }

</bundles_post_ra>
